<compile_context>
chip_gen: v7x
topology: tpu7x:2x2x1
jax: 0.10.0
libtpu: 0.0.40
codegen_flags: <defaults>
</compile_context>

<pallas_src>
import math

import jax
import jax.numpy as jnp
from jax.experimental import pallas as pl
from jax.experimental.pallas import tpu as pltpu


def _shared_dropout_kernel(mask_ref, x_ref, o_ref):
    """One grid step.

    mask_ref: (tB, 1, H) float32 tile   -- shared across the middle (S) axis.
    x_ref/o_ref: (tB, tS, H) tiles in VMEM.
    """
    x = x_ref[...]
    m = mask_ref[...]                                   # (tB, 1, H) f32
    o_ref[...] = (x.astype(jnp.float32) * m).astype(o_ref.dtype)


def _choose_tiles(B, S, H, itemsize):
    """Pick (tB, tS) so one x tile is ~2 MiB (=> ~8 MiB live with the default
    double-buffered in+out), well inside the 32 MiB scoped VMEM budget on
    v5e/v6e/v7x while being large enough to sit near the HBM roofline."""
    target_elems = (2 * 1024 * 1024) // max(itemsize, 1)
    sub = max(8, 32 // max(itemsize, 1))     # sublane quantum: f32->8, bf16->16, int8->32
    row_elems = S * H
    if row_elems <= target_elems:
        # Whole (S, H) plane per row is small: batch several rows per grid step
        # to amortize the ~0.35 us per-step overhead.
        tB = max(1, min(B, target_elems // max(row_elems, 1)))
        tS = S
    else:
        tB = 1
        tS = min(S, max(sub, (target_elems // max(H, 1)) // sub * sub))
    return tB, tS


def _dropout_mul_3d(x, mask):
    """x: [B, S, H]; mask: [B, H] float32.  Returns x * mask[:, None, :]."""
    B, S, H = x.shape

    # Lane-dense fold: if the last dim is not a multiple of 128, fold k
    # consecutive positions of the shared S axis into the last axis.  The mask
    # is constant over S, so it is simply tiled k times -- semantics unchanged.
    fold = 1
    if H % 128 != 0:
        k = 128 // math.gcd(H, 128)
        if k > 1 and S % k == 0:
            fold = k
    if fold > 1:
        xk = x.reshape(B, S // fold, H * fold)
        maskk = jnp.tile(mask, (1, fold))
    else:
        xk, maskk = x, mask
    Bk, Sk, Hk = xk.shape

    mask3 = maskk.reshape(Bk, 1, Hk).astype(jnp.float32)
    tB, tS = _choose_tiles(Bk, Sk, Hk, xk.dtype.itemsize)
    grid = (pl.cdiv(Bk, tB), pl.cdiv(Sk, tS))

    out = pl.pallas_call(
        _shared_dropout_kernel,
        out_shape=jax.ShapeDtypeStruct((Bk, Sk, Hk), xk.dtype),
        grid=grid,
        in_specs=[
            pl.BlockSpec((tB, 1, Hk), lambda b, s: (b, 0, 0)),   # mask (reused over s)
            pl.BlockSpec((tB, tS, Hk), lambda b, s: (b, s, 0)),  # x
        ],
        out_specs=pl.BlockSpec((tB, tS, Hk), lambda b, s: (b, s, 0)),
        compiler_params=pltpu.CompilerParams(
            dimension_semantics=("parallel", "parallel"),
            vmem_limit_bytes=32 * 1024 * 1024,
        ),
    )(mask3, xk)

    if fold > 1:
        out = out.reshape(B, S, H)
    return out


def shared_dropout(x, *, p=0.5, seed=0, key=None,
                   training=True, batch_first=True):
    """Pallas implementation of SharedDropout.forward.

    batch_first=True : x is [B, S, ...]; mask drawn over [B, ...] shared on dim 1.
    batch_first=False: x is [S, B, ...]; mask drawn over [B, ...] shared on dim 0.
    """
    if not training or p == 0.0:
        return x
    assert 0.0 <= p < 1.0, "dropout probability must be in [0, 1)"
    if key is None:
        key = jax.random.PRNGKey(seed)

    orig_shape = x.shape
    scale = 1.0 / (1.0 - p)

    if batch_first:
        B, S = orig_shape[0], orig_shape[1]
        H = int(math.prod(orig_shape[2:])) if len(orig_shape) > 2 else 1
        x3 = x.reshape(B, S, H)
        keep = jax.random.bernoulli(key, 1.0 - p, (B, H))
        mask2 = keep.astype(jnp.float32) * scale
    else:
        # Flatten (B, *rest) into the last axis: [S, B, ...] -> [1, S, B*rest].
        # This is a contiguous (metadata-only) reshape -- no transpose round-trip.
        S, B = orig_shape[0], orig_shape[1]
        rest = int(math.prod(orig_shape[2:])) if len(orig_shape) > 2 else 1
        x3 = x.reshape(1, S, B * rest)
        keep = jax.random.bernoulli(key, 1.0 - p, (B, rest))
        mask2 = (keep.astype(jnp.float32) * scale).reshape(1, B * rest)

    y3 = _dropout_mul_3d(x3, mask2)
    return y3.reshape(orig_shape)


if __name__ == "__main__":
    key = jax.random.PRNGKey(0)
    B, S, H = 2, 8, 32
    x = jax.random.normal(key, (B, S, H), dtype=jnp.float32)
    p = 0.5
    scale = 1.0 / (1.0 - p)

    # --- batch_first=True ---
    y = shared_dropout(x, p=p, seed=1234, training=True, batch_first=True)
    y = jax.block_until_ready(y)

    safe_x = jnp.where(jnp.abs(x) > 1e-6, x, 1.0)
    ratio = jnp.where(jnp.abs(x) > 1e-6, y / safe_x, 0.0)
    assert bool(jnp.allclose(ratio, ratio[:, :1, :], atol=1e-5)), \
        "mask not shared across dim 1"
    assert bool(jnp.all((jnp.abs(ratio) < 1e-5) |
                        (jnp.abs(ratio - scale) < 1e-4))), \
        "mask values not in {0, 1/(1-p)}"

    # --- eval mode is identity ---
    y_eval = shared_dropout(x, p=p, training=False)
    assert bool(jnp.array_equal(y_eval, x)), "eval mode must be identity"

    # --- batch_first=False (mask shared across dim 0, no transposes inside) ---
    x_sf = jnp.swapaxes(x, 0, 1)   # [S, B, H] test input
    y_sf = shared_dropout(x_sf, p=p, seed=7, training=True, batch_first=False)
    y_sf = jax.block_until_ready(y_sf)
    safe_sf = jnp.where(jnp.abs(x_sf) > 1e-6, x_sf, 1.0)
    r_sf = jnp.where(jnp.abs(x_sf) > 1e-6, y_sf / safe_sf, 0.0)
    assert bool(jnp.allclose(r_sf, r_sf[:1], atol=1e-5)), \
        "mask not shared across dim 0"

    print("KERNEL_OK")
</pallas_src>

<mosaic_0001>
module attributes {stable_mosaic.version = 11 : i64} {
  func.func @_shared_dropout_kernel(%arg0: i32, %arg1: i32, %arg2: memref<2x1x128xf32, #tpu.memory_space<vmem>>, %arg3: memref<2x2x128xf32, #tpu.memory_space<vmem>>, %arg4: memref<2x2x128xf32, #tpu.memory_space<vmem>>) attributes {dimension_semantics = [#tpu.dimension_semantics<parallel>, #tpu.dimension_semantics<parallel>], iteration_bounds = array<i64: 1, 1>, scalar_prefetch = 0 : i64, scratch_operands = 0 : i64, tpu.core_type = #tpu.core_type<tc>, window_params = [{transform_indices = @transform_0, window_bounds = array<i64: 2, 1, 128>}, {transform_indices = @transform_1, window_bounds = array<i64: 2, 2, 128>}, {transform_indices = @transform_2, window_bounds = array<i64: 2, 2, 128>}]} {
    %c0 = arith.constant 0 : index
    %c0_0 = arith.constant 0 : index
    %c0_1 = arith.constant 0 : index
    %0 = vector.load %arg3[%c0, %c0_0, %c0_1] : memref<2x2x128xf32, #tpu.memory_space<vmem>>, vector<2x2x128xf32>
    %c0_2 = arith.constant 0 : index
    %c0_3 = arith.constant 0 : index
    %c0_4 = arith.constant 0 : index
    %1 = vector.load %arg2[%c0_2, %c0_3, %c0_4] : memref<2x1x128xf32, #tpu.memory_space<vmem>>, vector<2x1x128xf32>
    %2 = vector.broadcast %1 : vector<2x1x128xf32> to vector<2x2x128xf32>
    %3 = arith.mulf %0, %2 : vector<2x2x128xf32>
    %c0_5 = arith.constant 0 : index
    %c0_6 = arith.constant 0 : index
    %c0_7 = arith.constant 0 : index
    %4 = vector.load %arg4[%c0_5, %c0_6, %c0_7] : memref<2x2x128xf32, #tpu.memory_space<vmem>>, vector<2x2x128xf32>
    tpu.vector_store %arg4[%c0_5, %c0_6, %c0_7], %3 {strides = array<i32>} : memref<2x2x128xf32, #tpu.memory_space<vmem>>, vector<2x2x128xf32>,
    return
  }
  func.func @transform_0(%arg0: i32, %arg1: i32) -> (i32, i32, i32) {
    %c0_i32 = arith.constant 0 : i32
    %c0_i32_0 = arith.constant 0 : i32
    %c0_i32_1 = arith.constant 0 : i32
    return %arg0, %c0_i32, %c0_i32_0 : i32, i32, i32
  }
  func.func @transform_1(%arg0: i32, %arg1: i32) -> (i32, i32, i32) {
    %c0_i32 = arith.constant 0 : i32
    %c0_i32_0 = arith.constant 0 : i32
    return %arg0, %arg1, %c0_i32 : i32, i32, i32
  }
  func.func @transform_2(%arg0: i32, %arg1: i32) -> (i32, i32, i32) {
    %c0_i32 = arith.constant 0 : i32
    %c0_i32_0 = arith.constant 0 : i32
    return %arg0, %arg1, %c0_i32 : i32, i32, i32
  }
}

</mosaic_0001>

<bundles_post_ra>
// kernel: tpu_custom_call.1
= control target key start
LH: loop header
LB: loop body
LE: loop exit
PB: predicated region body
PF: predicated region fallthrough
CT: control target
= control target key end

     0   :  { %7 = vsyncpa [#allocation3], 0  ;;  %s223_s0 = inlined_call_operand.hbm [shape: f32[2,1,128], index: 0, kind: input, shape index: {}]   ;;  %s224_s1 = inlined_call_operand.hbm [shape: f32[2,2,128], index: 1, kind: input, shape index: {}]   ;;  %s225_s2 = inlined_call_operand.hbm [shape: f32[2,2,128], index: 2, kind: output, shape index: {}]  }
   0x1   :  { %8 = vsyncpa [#allocation6], 0 }
   0x2   :  { %9 = vsyncpa [#allocation4], 0  ;;  %s159_s9 = smov [#allocation2]   ;;  %s87_s13 = scalar_lea.hbm %s223_s0, 32 }
   0x3   :  { %s15_s10 = sshll.u32 %s159_s9, 4  ;;  %p88_p0 = scmp.ne.s32.totalorder %s223_s0, %s87_s13  ;;  %s16_s10 = int_to_ptr.vmem [resolvable:$true] %s15_s10 }
   0x4   :  { %p91_p1 = scmp.lt.u32.totalorder %s87_s13, %s223_s0 }
   0x6   :  { %p93_p2 = pnand %p91_p1, %p88_p0 }
   0x8   :  { %96 = shalt.err (!%p93_p2)
}
   0x9   :  { %s97_s18 = scalar_lea.vmem %s16_s10, 32  ;;  %p102_p4 = scmp.lt.s32.totalorder %s16_s10, %s16_s10 }
   0xa   :  { %p98_p3 = scmp.ne.s32.totalorder %s16_s10, %s97_s18  ;;  %p103_p5 = scmp.lt.s32.totalorder %s97_s18, %s97_s18 }
   0xc   :  { %p104_p6 = por %p103_p5, %p102_p4 }
   0xe   :  { %p105_p7 = pnand %p104_p6, %p98_p3 }
  0x10   :  { %108 = shalt.err (!%p105_p7)
}
  0x11   :  { %s160_s19 = smov 16   ;;  %s161_s20 = smov 1  }
  0x12   :  { %21 = dma.hbm_to_vmem [thread:$0]  %s223_s0, 32, %s16_s10, [#allocation3], %s160_s19, %s160_s19, %s161_s20  }
  0x13   :  { %s162_s23 = smov [#allocation5]   ;;  %s109_s27 = scalar_lea.hbm %s224_s1, 64 }
  0x14   :  { %s27_s24 = sshll.u32 %s162_s23, 4  ;;  %p110_p8 = scmp.ne.s32.totalorder %s224_s1, %s109_s27  ;;  %s28_s24 = int_to_ptr.vmem [resolvable:$true] %s27_s24 }
  0x15   :  { %p113_p9 = scmp.lt.u32.totalorder %s109_s27, %s224_s1 }
  0x17   :  { %p115_p10 = pnand %p113_p9, %p110_p8 }
  0x19   :  { %118 = shalt.err (!%p115_p10)
}
  0x1a   :  { %s119_s4 = scalar_lea.vmem %s28_s24, 64  ;;  %p124_p12 = scmp.lt.s32.totalorder %s28_s24, %s28_s24 }
  0x1b   :  { %p120_p11 = scmp.ne.s32.totalorder %s28_s24, %s119_s4  ;;  %p125_p13 = scmp.lt.s32.totalorder %s119_s4, %s119_s4 }
  0x1d   :  { %p126_p0 = por %p125_p13, %p124_p12 }
  0x1f   :  { %p127_p1 = pnand %p126_p0, %p120_p11 }
  0x21   :  { %130 = shalt.err (!%p127_p1)
}
  0x22   :  { %s163_s0 = smov 32   ;;  %s164_s5 = smov 2  }
  0x23   :  { %33 = dma.hbm_to_vmem [thread:$0]  %s224_s1, 64, %s28_s24, [#allocation6], %s163_s0, %s163_s0, %s164_s5  }
  0x24   :  { %153 = dma.done.wait [#allocation3], 32  }
  0x25   :  { %154 = vsyncadd [#allocation3], 4294967264 }
  0x26   :  { %155 = dma.done.wait [#allocation6], 64  }
  0x27   :  { %156 = vsyncadd [#allocation6], 4294967232  ;;  %s165_s8 = smov [#allocation7]   ;;  %v40_v0 = vld [vmem:[#allocation5] sm:$0x3] }
  0x28   :  { %s65_s9 = sshll.u32 %s165_s8, 4  ;;  %v78_v1 = vld [vmem:[#allocation2] ss:$0 sm:$0xff]  ;;  %v41_v2 = vld [vmem:[#allocation5 + $0x2] sm:$0x3]  ;;  %s66_s9 = int_to_ptr.vmem [resolvable:$true] %s65_s9 }
  0x29   :  { %v56_v3 = vmul.f32 %v78_v1, %v40_v0  ;;  %v79_v4 = vld [vmem:[#allocation2 + $0x1] ss:$0 sm:$0xff]  ;;  %s131_s10 = scalar_lea.vmem %s66_s9, 64  ;;  %p136_p3 = scmp.lt.s32.totalorder %s66_s9, %s66_s9 }
  0x2a   :  { %v57_v5 = vmul.f32 %v79_v4, %v41_v2  ;;  %p132_p2 = scmp.ne.s32.totalorder %s66_s9, %s131_s10  ;;  %p137_p4 = scmp.lt.s32.totalorder %s131_s10, %s131_s10 }
  0x2b   :  { %58 = vst [vmem:[#allocation7] sm:$0x3] %v56_v3 }
  0x2c   :  { %59 = vst [vmem:[#allocation7 + $0x2] sm:$0x3] %v57_v5  ;;  %p138_p5 = por %p137_p4, %p136_p3 }
  0x2e   :  { %p139_p6 = pnand %p138_p5, %p132_p2 }
  0x30   :  { %142 = shalt.err (!%p139_p6)
}
  0x31   :  { %s143_s12 = scalar_lea.hbm %s225_s2, 64 }
  0x32   :  { %p144_p7 = scmp.ne.s32.totalorder %s225_s2, %s143_s12  ;;  %p147_p8 = scmp.lt.u32.totalorder %s143_s12, %s225_s2 }
  0x34   :  { %p149_p9 = pnand %p147_p8, %p144_p7 }
  0x36   :  { %152 = shalt.err (!%p149_p9)
}
  0x37   :  { %71 = dma.vmem_to_hbm [thread:$0]  %s66_s9, 64, %s225_s2, [#allocation4], %s163_s0, %s163_s0, %s164_s5  }
  0x38   :  { %157 = dma.done.wait [#allocation4], 64  }
  0x39   :  { %158 = vsyncadd [#allocation4], 4294967232 }
  0x3a   :  { %75 = vsyncpa [#allocation3], 1 }
  0x3b   :  { %76 = vsyncpa [#allocation6], 1 }
  0x3c   :  { %77 = vsyncpa [#allocation4], 1 }

</bundles_post_ra>
